<compile_context>
chip_gen: v6e
topology: v6e:2x2x1
jax: 0.10.0
libtpu: 0.0.40
codegen_flags: <defaults>
</compile_context>

<pallas_src>
import functools

import jax
import jax.numpy as jnp
import numpy as np
from jax import lax
from jax.experimental import pallas as pl
from jax.experimental.pallas import tpu as pltpu


# --------------------------------------------------------------------------- #
# Kernel
# --------------------------------------------------------------------------- #
def _triplet_adp_kernel(g_ref, sqr_ref, tcol_ref, trow_ref, fp_ref, cn_ref,
                        *, alpha, normalize, tm, n_valid, gram_bf16):
    i = pl.program_id(0)
    start = pl.multiple_of(i * tm, tm)

    xg = g_ref[...]                          # (Np, D) VMEM-resident gallery
    xa = g_ref[pl.ds(start, tm), :]          # (TM, D) anchor tile (no extra HBM read)

    lhs = xa.astype(jnp.bfloat16) if gram_bf16 else xa
    rhs = xg.astype(jnp.bfloat16) if gram_bf16 else xg
    # MXU Gram: contract dim 1 of both operands (RHS transpose absorbed), f32 acc.
    gram = lax.dot_general(lhs, rhs,
                           dimension_numbers=(((1,), (1,)), ((), ())),
                           preferred_element_type=jnp.float32)      # (TM, Np)

    xa32 = xa.astype(jnp.float32)
    sq_a = jnp.sum(xa32 * xa32, axis=1, keepdims=True)              # (TM, 1)
    sq_b = sqr_ref[...]                                             # (1, Np)

    if normalize:
        # Fused L2 normalization: rescale Gram / norms instead of re-reading x.
        inv_a = 1.0 / (jnp.sqrt(sq_a) + 1e-12)
        inv_b = 1.0 / (jnp.sqrt(sq_b) + 1e-12)
        gram = gram * (inv_a * inv_b)
        sq_a = sq_a * (inv_a * inv_a)
        sq_b = sq_b * (inv_b * inv_b)

    dist = jnp.sqrt(jnp.maximum(sq_a + sq_b - 2.0 * gram, 1e-12))   # (TM, Np)

    tcol = tcol_ref[pl.ds(start, tm), :]                            # (TM, 1)
    trow = trow_ref[...]                                            # (1, Np)
    same = tcol == trow                                             # (TM, Np) bool

    if n_valid is not None:
        # Padded batch: padded gallery columns must not act as positives/negatives.
        col = lax.broadcasted_iota(jnp.int32, trow.shape, 1)
        valid = col < n_valid
        pos = jnp.logical_and(same, valid)
        neg = jnp.logical_and(jnp.logical_not(same), valid)
    else:
        pos = same
        neg = None                                                   # via where(same, 0, .)

    ad = dist if alpha == 1.0 else alpha * dist

    # Positive branch. NOTE: the max is over where(mask, ., 0) to keep exact
    # parity with the PyTorch softmax_weights quirk (zeros participate).
    max_p = jnp.max(jnp.where(pos, ad, 0.0), axis=1, keepdims=True)
    e_p = jnp.where(pos, jnp.exp(ad - max_p), 0.0)                   # single exp
    fp = jnp.sum(dist * e_p, axis=1, keepdims=True) / (
        jnp.sum(e_p, axis=1, keepdims=True) + 1e-6)                  # (TM, 1)

    # Negative branch. max_n == 0 whenever alpha >= 0: the diagonal (self) is a
    # positive, so a 0 always participates in the masked max and -ad <= 0.
    # (Only valid while gallery == full anchor set, which is always true here.)
    if alpha < 0.0:
        nm = neg if neg is not None else jnp.logical_not(same)
        max_n = jnp.max(jnp.where(nm, -ad, 0.0), axis=1, keepdims=True)
        e_all = jnp.exp(-ad - max_n)
    else:
        e_all = jnp.exp(-ad)                                         # single exp
    e_n = jnp.where(same, 0.0, e_all) if neg is None else jnp.where(neg, e_all, 0.0)
    cn = jnp.sum(dist * e_n, axis=1, keepdims=True) / (
        jnp.sum(e_n, axis=1, keepdims=True) + 1e-6)                  # (TM, 1)

    fp_ref[...] = fp
    cn_ref[...] = cn


# --------------------------------------------------------------------------- #
# Tiling / VMEM budgeting
# --------------------------------------------------------------------------- #
def _round_up(v, m):
    return -(-v // m) * m


def _vmem_capacity():
    try:
        return int(pltpu.get_tpu_info().vmem_capacity_bytes)
    except Exception:  # pragma: no cover - be conservative (v7x per-core size)
        return 64 << 20


def _vmem_estimate(np_, d, tm, itemsize):
    """Conservative per-core VMEM footprint for one grid step."""
    gallery = np_ * d * itemsize                 # resident gallery (single copy)
    rows = 2 * 8 * np_ * 4                       # (1, Np) sq_row + label row (sublane-padded)
    tcol = np_ * 128 * 4                         # (Np, 1) int32 labels (lane-padded)
    outs = 2 * 2 * tm * 128 * 4                  # double-buffered (TM, 1) output blocks
    anchor = tm * d * (itemsize + 4)             # anchor tile + its f32 copy
    temps = 8 * tm * np_ * 4                     # ~8 live (TM, Np) f32 intermediates
    return gallery + rows + tcol + outs + anchor + temps


def _choose_tiling(n, d, itemsize, capacity):
    """Pick (TM, padded_N) so resident gallery + temporaries fit the per-core budget."""
    budget = int(capacity * 0.8)
    min_tm = 8 if itemsize >= 4 else (16 if itemsize == 2 else 32)
    base = 128 if n >= 128 else min_tm           # keep the lane (gallery) axis dense
    np_ = _round_up(n, base)
    tm = min_tm                                  # may still exceed budget for huge N*D
    for cand in (512, 256, 128, 64, 32, 16, 8):  # 256-multiples preferred (v6e/v7x MXU)
        if cand < min_tm or cand > np_ or np_ % cand != 0:
            continue
        if _vmem_estimate(np_, d, cand, itemsize) <= budget:
            tm = cand
            break
    return tm, np_


# --------------------------------------------------------------------------- #
# Wrapper (forward of TripletLoss_ADP)
# --------------------------------------------------------------------------- #
def _epilogue(fp, cn, gamma, square):
    """Tiny O(N) epilogue (SoftMarginLoss + correct count) in plain JAX."""
    if int(square) == 0:
        loss = jnp.mean(jax.nn.softplus(-gamma * (cn - fp)))
    else:
        diff_pow = jnp.minimum((fp - cn) ** 2 * gamma, 88.0)
        y = 1.0 - 2.0 * (fp > cn).astype(jnp.float32)     # -(y1 + (y1 - 1))
        loss = jnp.mean(jax.nn.softplus(-y * diff_pow))
    correct = jnp.sum((cn >= fp).astype(jnp.int32))
    return loss, correct


def triplet_loss_adp(inputs, targets, *, alpha=1.0, gamma=1.0, square=0,
                     normalize_feature=False, block_rows=None, gram_in_bf16=False):
    """JAX/Pallas equivalent of TripletLoss_ADP.forward. Returns (loss, correct)."""
    n, d = inputs.shape
    itemsize = jnp.dtype(inputs.dtype).itemsize
    capacity = _vmem_capacity()

    if block_rows is not None:
        min_tm = 8 if itemsize >= 4 else (16 if itemsize == 2 else 32)
        tm = max(min_tm, _round_up(int(block_rows), 8))
        np_ = _round_up(n, tm)
    else:
        tm, np_ = _choose_tiling(n, d, itemsize, capacity)

    x = inputs
    t = targets.astype(jnp.int32)
    if np_ != n:
        x = jnp.pad(x, ((0, np_ - n), (0, 0)))
        t = jnp.pad(t, (0, np_ - n), constant_values=-1)   # sentinel label on pad rows

    # Gallery row-of-squares (f32). Kept in the wrapper (one tiny fused XLA pass):
    # fusing it behind pl.when(program_id==0) would be unsafe under megacore
    # "parallel" grid sharding (program 0 runs on only one core's VMEM scratch).
    sq_row = jnp.sum(jnp.square(x.astype(jnp.float32)), axis=1)[None, :]   # (1, Np)
    tcol = t.reshape(np_, 1)
    trow = t.reshape(1, np_)

    est = _vmem_estimate(np_, d, tm, itemsize)
    vmem_limit = int(min(capacity * 0.94, max(est * 1.4, 32 * 1024 * 1024)))

    kernel = functools.partial(
        _triplet_adp_kernel,
        alpha=float(alpha),
        normalize=bool(normalize_feature),
        tm=tm,
        n_valid=(n if np_ != n else None),
        gram_bf16=bool(gram_in_bf16))

    resident = [pl.BlockSpec(memory_space=pltpu.MemorySpace.VMEM) for _ in range(4)]

    fp, cn = pl.pallas_call(
        kernel,
        out_shape=(jax.ShapeDtypeStruct((np_, 1), jnp.float32),
                   jax.ShapeDtypeStruct((np_, 1), jnp.float32)),
        grid=(np_ // tm,),
        in_specs=resident,                         # gallery, sq_row, tcol, trow: single VMEM copy
        out_specs=(pl.BlockSpec((tm, 1), lambda i: (i, 0)),
                   pl.BlockSpec((tm, 1), lambda i: (i, 0))),
        compiler_params=pltpu.CompilerParams(
            dimension_semantics=("parallel",),
            vmem_limit_bytes=vmem_limit),
    )(x, sq_row, tcol, trow)

    fp = fp[:n, 0]
    cn = cn[:n, 0]
    return _epilogue(fp, cn, gamma, square)


# --------------------------------------------------------------------------- #
# Pure-JAX reference (mirrors the PyTorch forward exactly)
# --------------------------------------------------------------------------- #
def _reference_fp_cn(inputs, targets, alpha=1.0, normalize_feature=False):
    x = inputs.astype(jnp.float32)
    if normalize_feature:
        x = x / (jnp.linalg.norm(x, axis=-1, keepdims=True) + 1e-12)
    sq = jnp.sum(x * x, axis=1, keepdims=True)
    dist = jnp.sqrt(jnp.clip(sq + sq.T - 2.0 * (x @ x.T), 1e-12, None))
    is_pos = (targets[:, None] == targets[None, :]).astype(jnp.float32)
    is_neg = 1.0 - is_pos
    dist_ap = dist * is_pos
    dist_an = dist * is_neg

    def softmax_weights(dd, mask):
        max_v = jnp.max(dd * mask, axis=1, keepdims=True)
        diff = dd - max_v
        z = jnp.sum(jnp.exp(diff) * mask, axis=1, keepdims=True) + 1e-6
        return jnp.exp(diff) * mask / z

    w_ap = softmax_weights(dist_ap * alpha, is_pos)
    w_an = softmax_weights(-dist_an * alpha, is_neg)
    fp = jnp.sum(dist_ap * w_ap, axis=1)
    cn = jnp.sum(dist_an * w_an, axis=1)
    return fp, cn


# --------------------------------------------------------------------------- #
# Self-test
# --------------------------------------------------------------------------- #
if __name__ == "__main__":
    key = jax.random.PRNGKey(0)

    # Case 1: small batch, no padding, square=0.
    N1, D = 8, 32
    x1 = jax.random.normal(key, (N1, D), dtype=jnp.float32)
    t1 = jnp.array([0, 0, 1, 1, 2, 2, 3, 3], dtype=jnp.int32)
    loss1, corr1 = triplet_loss_adp(x1, t1, alpha=1.0, gamma=1.0, square=0)
    jax.block_until_ready((loss1, corr1))
    ref_loss1, ref_corr1 = _epilogue(*_reference_fp_cn(x1, t1, 1.0, False), 1.0, 0)
    np.testing.assert_allclose(np.asarray(loss1), np.asarray(ref_loss1),
                               rtol=5e-3, atol=5e-3)
    assert int(corr1) == int(ref_corr1)

    # Case 2: ragged batch (exercises padding mask + multi-tile grid), alpha != 1.
    N2 = 20
    x2 = jax.random.normal(jax.random.fold_in(key, 1), (N2, D), dtype=jnp.float32)
    t2 = jnp.array([0] * 5 + [1] * 5 + [2] * 5 + [3] * 5, dtype=jnp.int32)
    loss2, corr2 = triplet_loss_adp(x2, t2, alpha=2.0, gamma=1.0, square=0)
    jax.block_until_ready((loss2, corr2))
    ref_loss2, ref_corr2 = _epilogue(*_reference_fp_cn(x2, t2, 2.0, False), 1.0, 0)
    np.testing.assert_allclose(np.asarray(loss2), np.asarray(ref_loss2),
                               rtol=5e-3, atol=5e-3)
    assert int(corr2) == int(ref_corr2)

    # Case 3: square==1 path with fused L2 normalization.
    loss3, corr3 = triplet_loss_adp(x1, t1, alpha=1.0, gamma=1.0, square=1,
                                    normalize_feature=True)
    jax.block_until_ready((loss3, corr3))
    ref_loss3, ref_corr3 = _epilogue(*_reference_fp_cn(x1, t1, 1.0, True), 1.0, 1)
    np.testing.assert_allclose(np.asarray(loss3), np.asarray(ref_loss3),
                               rtol=5e-3, atol=5e-3)
    assert int(corr3) == int(ref_corr3)

    print("KERNEL_OK")
</pallas_src>

<mosaic_0001>
module attributes {stable_mosaic.version = 11 : i64} {
  func.func @_triplet_adp_kernel(%arg0: i32, %arg1: memref<8x32xf32, #tpu.memory_space<vmem>>, %arg2: memref<1x8xf32, #tpu.memory_space<vmem>>, %arg3: memref<8x1xi32, #tpu.memory_space<vmem>>, %arg4: memref<1x8xi32, #tpu.memory_space<vmem>>, %arg5: memref<8x1xf32, #tpu.memory_space<vmem>>, %arg6: memref<8x1xf32, #tpu.memory_space<vmem>>) attributes {dimension_semantics = [#tpu.dimension_semantics<parallel>], iteration_bounds = array<i64: 1>, scalar_prefetch = 0 : i64, scratch_operands = 0 : i64, tpu.core_type = #tpu.core_type<tc>, window_params = [{pipeline_mode = #tpu.pipeline_mode<synchronous>, transform_indices = @transform_0, window_bounds = array<i64: 8, 32>}, {pipeline_mode = #tpu.pipeline_mode<synchronous>, transform_indices = @transform_1, window_bounds = array<i64: 1, 8>}, {pipeline_mode = #tpu.pipeline_mode<synchronous>, transform_indices = @transform_2, window_bounds = array<i64: 8, 1>}, {pipeline_mode = #tpu.pipeline_mode<synchronous>, transform_indices = @transform_3, window_bounds = array<i64: 1, 8>}, {transform_indices = @transform_4, window_bounds = array<i64: 8, 1>}, {transform_indices = @transform_5, window_bounds = array<i64: 8, 1>}]} {
    %c8_i32 = arith.constant 8 : i32
    %0 = arith.muli %arg0, %c8_i32 : i32
    %1 = tpu.assume_multiple %0, 8 : i32
    %c0 = arith.constant 0 : index
    %c0_0 = arith.constant 0 : index
    %2 = vector.load %arg1[%c0, %c0_0] : memref<8x32xf32, #tpu.memory_space<vmem>>, vector<8x32xf32>
    %3 = arith.index_cast %1 : i32 to index
    %c0_1 = arith.constant 0 : index
    %4 = vector.load %arg1[%3, %c0_1] : memref<8x32xf32, #tpu.memory_space<vmem>>, vector<8x32xf32>
    %cst = arith.constant dense<0.000000e+00> : vector<8x8xf32>
    %5 = tpu.matmul %4, %2, %cst {dimension_numbers = #tpu.dot_dimension_numbers<[1], [1], [0], [0], [0, 0, 1, 0], [], []>} : vector<8x32xf32>, vector<8x32xf32>, vector<8x8xf32> -> vector<8x8xf32>
    %6 = arith.mulf %4, %4 : vector<8x32xf32>
    %cst_2 = arith.constant dense<0.000000e+00> : vector<8xf32>
    %7 = vector.multi_reduction <add>, %6, %cst_2 [1] : vector<8x32xf32> to vector<8xf32>
    %8 = vector.shape_cast %7 : vector<8xf32> to vector<8x1xf32>
    %c0_3 = arith.constant 0 : index
    %c0_4 = arith.constant 0 : index
    %9 = vector.load %arg2[%c0_3, %c0_4] : memref<1x8xf32, #tpu.memory_space<vmem>>, vector<1x8xf32>
    %10 = vector.broadcast %8 : vector<8x1xf32> to vector<8x8xf32>
    %11 = vector.broadcast %9 : vector<1x8xf32> to vector<8x8xf32>
    %12 = arith.addf %10, %11 : vector<8x8xf32>
    %cst_5 = arith.constant 2.000000e+00 : f32
    %13 = vector.broadcast %cst_5 : f32 to vector<8x8xf32>
    %14 = arith.mulf %13, %5 : vector<8x8xf32>
    %15 = arith.subf %12, %14 : vector<8x8xf32>
    %cst_6 = arith.constant 9.99999996E-13 : f32
    %16 = vector.broadcast %cst_6 : f32 to vector<8x8xf32>
    %17 = arith.maximumf %15, %16 : vector<8x8xf32>
    %18 = math.sqrt %17 : vector<8x8xf32>
    %19 = arith.index_cast %1 : i32 to index
    %c0_7 = arith.constant 0 : index
    %20 = vector.load %arg3[%19, %c0_7] : memref<8x1xi32, #tpu.memory_space<vmem>>, vector<8x1xi32>
    %c0_8 = arith.constant 0 : index
    %c0_9 = arith.constant 0 : index
    %21 = vector.load %arg4[%c0_8, %c0_9] : memref<1x8xi32, #tpu.memory_space<vmem>>, vector<1x8xi32>
    %22 = vector.broadcast %20 : vector<8x1xi32> to vector<8x8xi32>
    %23 = vector.broadcast %21 : vector<1x8xi32> to vector<8x8xi32>
    %24 = arith.cmpi eq, %22, %23 : vector<8x8xi32>
    %cst_10 = arith.constant 0.000000e+00 : f32
    %25 = vector.broadcast %cst_10 : f32 to vector<8x8xf32>
    %26 = arith.select %24, %18, %25 : vector<8x8xi1>, vector<8x8xf32>
    %cst_11 = arith.constant dense<0xFF800000> : vector<8xf32>
    %27 = vector.multi_reduction <maximumf>, %26, %cst_11 [1] : vector<8x8xf32> to vector<8xf32>
    %28 = vector.shape_cast %27 : vector<8xf32> to vector<8x1xf32>
    %29 = vector.broadcast %28 : vector<8x1xf32> to vector<8x8xf32>
    %30 = arith.subf %18, %29 : vector<8x8xf32>
    %31 = math.exp %30 : vector<8x8xf32>
    %cst_12 = arith.constant 0.000000e+00 : f32
    %32 = vector.broadcast %cst_12 : f32 to vector<8x8xf32>
    %33 = arith.select %24, %31, %32 : vector<8x8xi1>, vector<8x8xf32>
    %34 = arith.mulf %18, %33 : vector<8x8xf32>
    %cst_13 = arith.constant dense<0.000000e+00> : vector<8xf32>
    %35 = vector.multi_reduction <add>, %34, %cst_13 [1] : vector<8x8xf32> to vector<8xf32>
    %36 = vector.shape_cast %35 : vector<8xf32> to vector<8x1xf32>
    %cst_14 = arith.constant dense<0.000000e+00> : vector<8xf32>
    %37 = vector.multi_reduction <add>, %33, %cst_14 [1] : vector<8x8xf32> to vector<8xf32>
    %38 = vector.shape_cast %37 : vector<8xf32> to vector<8x1xf32>
    %cst_15 = arith.constant 9.99999997E-7 : f32
    %39 = vector.broadcast %cst_15 : f32 to vector<8x1xf32>
    %40 = arith.addf %38, %39 : vector<8x1xf32>
    %41 = arith.divf %36, %40 : vector<8x1xf32>
    %cst_16 = arith.constant 0.000000e+00 : f32
    %42 = vector.broadcast %cst_16 : f32 to vector<8x8xf32>
    %43 = arith.subf %42, %18 : vector<8x8xf32>
    %44 = math.exp %43 : vector<8x8xf32>
    %cst_17 = arith.constant 0.000000e+00 : f32
    %45 = vector.broadcast %cst_17 : f32 to vector<8x8xf32>
    %46 = arith.select %24, %45, %44 : vector<8x8xi1>, vector<8x8xf32>
    %47 = arith.mulf %18, %46 : vector<8x8xf32>
    %cst_18 = arith.constant dense<0.000000e+00> : vector<8xf32>
    %48 = vector.multi_reduction <add>, %47, %cst_18 [1] : vector<8x8xf32> to vector<8xf32>
    %49 = vector.shape_cast %48 : vector<8xf32> to vector<8x1xf32>
    %cst_19 = arith.constant dense<0.000000e+00> : vector<8xf32>
    %50 = vector.multi_reduction <add>, %46, %cst_19 [1] : vector<8x8xf32> to vector<8xf32>
    %51 = vector.shape_cast %50 : vector<8xf32> to vector<8x1xf32>
    %cst_20 = arith.constant 9.99999997E-7 : f32
    %52 = vector.broadcast %cst_20 : f32 to vector<8x1xf32>
    %53 = arith.addf %51, %52 : vector<8x1xf32>
    %54 = arith.divf %49, %53 : vector<8x1xf32>
    %c0_21 = arith.constant 0 : index
    %c0_22 = arith.constant 0 : index
    %55 = vector.load %arg5[%c0_21, %c0_22] : memref<8x1xf32, #tpu.memory_space<vmem>>, vector<8x1xf32>
    tpu.vector_store %arg5[%c0_21, %c0_22], %41 {strides = array<i32>} : memref<8x1xf32, #tpu.memory_space<vmem>>, vector<8x1xf32>,
    %c0_23 = arith.constant 0 : index
    %c0_24 = arith.constant 0 : index
    %56 = vector.load %arg6[%c0_23, %c0_24] : memref<8x1xf32, #tpu.memory_space<vmem>>, vector<8x1xf32>
    tpu.vector_store %arg6[%c0_23, %c0_24], %54 {strides = array<i32>} : memref<8x1xf32, #tpu.memory_space<vmem>>, vector<8x1xf32>,
    return
  }
  func.func @transform_0(%arg0: i32) -> (i32, i32) {
    %c0_i32 = arith.constant 0 : i32
    %c0_i32_0 = arith.constant 0 : i32
    %c0_i32_1 = arith.constant 0 : i32
    return %c0_i32, %c0_i32_0 : i32, i32
  }
  func.func @transform_1(%arg0: i32) -> (i32, i32) {
    %c0_i32 = arith.constant 0 : i32
    %c0_i32_0 = arith.constant 0 : i32
    %c0_i32_1 = arith.constant 0 : i32
    return %c0_i32, %c0_i32_0 : i32, i32
  }
  func.func @transform_2(%arg0: i32) -> (i32, i32) {
    %c0_i32 = arith.constant 0 : i32
    %c0_i32_0 = arith.constant 0 : i32
    %c0_i32_1 = arith.constant 0 : i32
    return %c0_i32, %c0_i32_0 : i32, i32
  }
  func.func @transform_3(%arg0: i32) -> (i32, i32) {
    %c0_i32 = arith.constant 0 : i32
    %c0_i32_0 = arith.constant 0 : i32
    %c0_i32_1 = arith.constant 0 : i32
    return %c0_i32, %c0_i32_0 : i32, i32
  }
  func.func @transform_4(%arg0: i32) -> (i32, i32) {
    %c0_i32 = arith.constant 0 : i32
    %c0_i32_0 = arith.constant 0 : i32
    return %arg0, %c0_i32 : i32, i32
  }
  func.func @transform_5(%arg0: i32) -> (i32, i32) {
    %c0_i32 = arith.constant 0 : i32
    %c0_i32_0 = arith.constant 0 : i32
    return %arg0, %c0_i32 : i32, i32
  }
}

</mosaic_0001>

<bundles_post_ra>
// kernel: tpu_custom_call.1
= control target key start
LH: loop header
LB: loop body
LE: loop exit
PB: predicated region body
PF: predicated region fallthrough
CT: control target
= control target key end

     0   :  { %vm23_vm0 = vcmask 261120   ;;  %v202_v0 = vmov 0.0   ;;  %vm203_vm1 = vmmov 0   ;;  %v204_v3 = vmov 0   ;;  %s261_s0 = inlined_call_operand.vmem [shape: f32[8,32], index: 0, kind: input, shape index: {}]   ;;  %s262_s2 = inlined_call_operand.vmem [shape: s32[8,1], index: 2, kind: input, shape index: {}]   ;;  %s263_s1 = inlined_call_operand.vmem [shape: f32[1,8], index: 1, kind: input, shape index: {}]   ;;  %s264_s3 = inlined_call_operand.vmem [shape: s32[1,8], index: 3, kind: input, shape index: {}]   ;;  %s265_s4 = inlined_call_operand.vmem [shape: f32[8,1], index: 4, kind: output, shape index: {0}]   ;;  %s266_s5 = inlined_call_operand.vmem [shape: f32[8,1], index: 5, kind: output, shape index: {1}]  }
   0x1   :  { %183 = vmatprep.subr.mxu0 %v202_v0  ;;  %v20_v1 = vld [vmem:[%s261_s0] sm:$0xff]  ;;  %185 = vmatprep.mubr.msk.f32.mxu0 %vm203_vm1, %v202_v0  ;;  %vm134_vm5 = vcmask 64512   ;;  %vm166_vm6 = vcmask 7168  }
   0x2   :  { %184 = vmatpush3.xpose.msk.msra.mxu0 %vm23_vm0, %v20_v1  ;;  %v100_v2 = vmul.f32 %v20_v1, %v20_v1  ;;  %191 = vset.pattern.permute.xlu0 %v204_v3  ;;  %v123_v5 = vld [vmem:[%s262_s2] sm:$0xff] }
   0x3   :  { %v179_v6 = vld [vmem:[%s263_s1] ss:$0 sm:$0xff] }
   0x4   :  { %v101_v4 = vsel %vm23_vm0, %v100_v2, 0.0  ;;  %v180_v14 = vld [vmem:[%s264_s3] ss:$0 sm:$0xff] }
   0x5   :  { %186 = vmatmul.mubr.msk.f32.vlgmr.msra.gmra.mxu0 %vm23_vm0, %v20_v1  ;;  %102 = vadd.xlane.f32.xlu0 %v101_v4 }
  0x1b   :  { %126 = vperm.xlu0 %191, %v123_v5  }
  0x8e   :  { %v103_v7 = vpop.xlane.xlu0 %102 }
  0x8f   :  { %v111_v8 = vadd.f32 %v179_v6, %v103_v7 }
  0x96   :  { %v127_v15 = vpop.permute.xlu0 %126 }
  0x97   :  { %vm132_vm2 = vcmp.eq.s32.totalorder %v127_v15, %v180_v14 }
  0xc5   :  { %v96_v9 = vpop.f32.mrf.mxu0 }
  0xc6   :  { %v112_v10 = vmul.f32 2.0, %v96_v9 }
  0xc7   :  { %v187_v11 = vpop.f32.mrf.mxu0 }
  0xc8   :  { %v113_v12 = vsub.f32 %v111_v8, %v112_v10 }
  0xca   :  { %v114_v13 = vmax.f32 %v113_v12, 1e-12 }
  0xcc   :  { %192 = vrsqrt.f32 %v114_v13  ;;  %vm117_vm3 = vcmp.eq.f32.partialorder %v114_v13, inf  ;;  %v120_v18 = vand.u32 2147483648, %v114_v13  ;;  %vm119_vm4 = vcmp.eq.f32.partialorder %v114_v13, 0.0 }
  0xd9   :  { %v193_v16 = vpop.eup %192 }
  0xda   :  { %v116_v17 = vmul.f32 %v193_v16, %v114_v13 }
  0xdc   :  { %v118_v19 = vsel %vm117_vm3, %v114_v13, %v116_v17 }
  0xdd   :  { %v121_v20 = vsel %vm119_vm4, %v120_v18, %v118_v19 }
  0xde   :  { %v133_v21 = vsel %vm132_vm2, %v121_v20, 0.0  ;;  %v152_v23 = vsub.f32 0.0, %v121_v20 }
  0xdf   :  { %v135_v22 = vsel %vm134_vm5, %v133_v21, -inf }
  0xe0   :  { %136 = vmax.xlane.f32.xlu1 %v135_v22  ;;  %v153_v24 = vmul.f32 1.442695, %v152_v23 }
  0xe2   :  { %194 = vpow2.f32 %v153_v24 }
  0xef   :  { %v195_v28 = vpop.eup %194 }
  0xf0   :  { %v155_v32 = vsel %vm132_vm2, 0.0, %v195_v28 }
  0xf1   :  { %v160_v33 = vsel %vm134_vm5, %v155_v32, 0.0  ;;  %v156_v36 = vmul.f32 %v155_v32, %v121_v20 }
  0xf3   :  { %v157_v37 = vsel %vm134_vm5, %v156_v36, 0.0 }
 0x169   :  { %v137_v25 = vpop.xlane.xlu1 %136 }
 0x16a   :  { %v138_v26 = vsub.f32 %v121_v20, %v137_v25 }
 0x16c   :  { %v139_v27 = vmul.f32 1.442695, %v138_v26 }
 0x16e   :  { %196 = vpow2.f32 %v139_v27 }
 0x17b   :  { %v197_v29 = vpop.eup %196 }
 0x17c   :  { %v141_v30 = vsel %vm132_vm2, %v197_v29, 0.0 }
 0x17d   :  { %v146_v31 = vsel %vm134_vm5, %v141_v30, 0.0  ;;  %v142_v34 = vmul.f32 %v141_v30, %v121_v20 }
 0x17e   :  { %147 = vadd.xlane.f32.xlu1 %v146_v31 }
 0x17f   :  { %v143_v35 = vsel %vm134_vm5, %v142_v34, 0.0 }
 0x182   :  { %161 = vadd.xlane.f32.xlu1 %v160_v33 }
 0x186   :  { %144 = vadd.xlane.f32.xlu1 %v143_v35 }
 0x18a   :  { %158 = vadd.xlane.f32.xlu1 %v157_v37 }
 0x207   :  { %v148_v38 = vpop.xlane.xlu1 %147 }
 0x208   :  { %v149_v39 = vadd.f32 1e-06, %v148_v38 }
 0x20a   :  { %198 = vrcp.f32 %v149_v39 }
 0x20b   :  { %v162_v40 = vpop.xlane.xlu1 %161 }
 0x20c   :  { %v163_v41 = vadd.f32 1e-06, %v162_v40 }
 0x20e   :  { %200 = vrcp.f32 %v163_v41 }
 0x20f   :  { %v145_v42 = vpop.xlane.xlu1 %144 }
 0x213   :  { %v159_v46 = vpop.xlane.xlu1 %158 }
 0x217   :  { %v199_v43 = vpop.eup %198 }
 0x218   :  { %v151_v44 = vmul.f32 %v199_v43, %v145_v42 }
 0x21a   :  { %167 = vst.msk [vmem:[%s265_s4] sm:$0xff] %vm166_vm6, %v151_v44 }
 0x21b   :  { %v201_v45 = vpop.eup %200 }
 0x21c   :  { %v165_v47 = vmul.f32 %v201_v45, %v159_v46 }
 0x21e   :  { %168 = vst.msk [vmem:[%s266_s5] sm:$0xff] %vm166_vm6, %v165_v47 }

</bundles_post_ra>
